<compile_context>
chip_gen: v6e
topology: v6e:2x2x1
jax: 0.10.0
libtpu: 0.0.40
codegen_flags: <defaults>
</compile_context>

<pallas_src>
import functools

import jax
import jax.numpy as jnp
from jax.experimental import pallas as pl
from jax.experimental.pallas import tpu as pltpu


def _round_up(v: int, m: int) -> int:
    return ((v + m - 1) // m) * m


def expert_mlp_kernel(x_ref, wgu_ref, wd_ref, o_ref, acc_ref, *, ti):
    # x_ref:   (tm, H)       token tile, native dtype
    # wgu_ref: (H, 2*ti)     fused [gate | up] weight tile for I-block j
    # wd_ref:  (ti, H)       down_proj weight tile for I-block j
    # o_ref:   (tm, H)       output tile (resident across the j axis)
    # acc_ref: (tm, H) f32   accumulator scratch
    j = pl.program_id(1)

    @pl.when(j == 0)
    def _():
        acc_ref[...] = jnp.zeros_like(acc_ref)

    x = x_ref[...]  # keep native (e.g. bf16) operands for the MXU

    # Fused gate/up projection: one wide MXU pass, f32 accumulation.
    gu = jnp.dot(x, wgu_ref[...], preferred_element_type=jnp.float32)  # (tm, 2*ti)
    g = gu[:, :ti]
    u = gu[:, ti:]

    # SwiGLU in f32 (EUP sigmoid + VPU muls), downcast before the MXU.
    h = (g * jax.nn.sigmoid(g) * u).astype(wd_ref.dtype)               # (tm, ti)

    acc_ref[...] += jnp.dot(h, wd_ref[...], preferred_element_type=jnp.float32)

    @pl.when(j == pl.num_programs(1) - 1)
    def _():
        o_ref[...] = acc_ref[...].astype(o_ref.dtype)


def expert_mlp(x, w_gate, w_up, w_down, *, tm=256, ti=512, vmem_limit_bytes=None):
    """x: (batch, seq, hidden).  PyTorch nn.Linear weights:
       w_gate, w_up: (I, H);  w_down: (H, I)."""
    B, S, H = x.shape
    I = w_gate.shape[0]
    T = B * S
    dtype = x.dtype

    # --- padded / tiled dimensions -------------------------------------
    H_pad = _round_up(H, 128)
    ti = max(128, (ti // 128) * 128)
    ti = min(ti, _round_up(I, 128))
    I_pad = _round_up(I, ti)
    tm = max(16, tm)                      # >=16 keeps bf16 sublane tiling legal
    T_pad = _round_up(T, tm)
    n_i = I_pad // ti

    # --- pad inputs / weights (zero padding is exact for SwiGLU) -------
    x2d = jnp.pad(x.reshape(T, H), ((0, T_pad - T), (0, H_pad - H)))
    wg_t = jnp.pad(w_gate.T, ((0, H_pad - H), (0, I_pad - I)))   # (H_pad, I_pad)
    wu_t = jnp.pad(w_up.T,   ((0, H_pad - H), (0, I_pad - I)))   # (H_pad, I_pad)
    wd_t = jnp.pad(w_down.T, ((0, I_pad - I), (0, H_pad - H)))   # (I_pad, H_pad)

    # Fused gate/up layout: for I-tile j, columns [j*2ti, j*2ti+ti) are the
    # gate tile and [j*2ti+ti, (j+1)*2ti) are the up tile.
    wgu = jnp.concatenate(
        [wg_t.reshape(H_pad, n_i, ti), wu_t.reshape(H_pad, n_i, ti)], axis=2
    ).reshape(H_pad, n_i * 2 * ti)

    kernel = functools.partial(expert_mlp_kernel, ti=ti)

    compiler_kwargs = dict(dimension_semantics=("parallel", "arbitrary"))
    if vmem_limit_bytes is not None:
        compiler_kwargs["vmem_limit_bytes"] = vmem_limit_bytes

    out2d = pl.pallas_call(
        kernel,
        out_shape=jax.ShapeDtypeStruct((T_pad, H_pad), dtype),
        grid_spec=pltpu.PrefetchScalarGridSpec(
            num_scalar_prefetch=0,
            grid=(T_pad // tm, n_i),
            in_specs=[
                pl.BlockSpec((tm, H_pad), lambda i, j: (i, 0)),      # token tile
                pl.BlockSpec((H_pad, 2 * ti), lambda i, j: (0, j)),  # fused gate|up tile
                pl.BlockSpec((ti, H_pad), lambda i, j: (j, 0)),      # down-proj tile
            ],
            out_specs=pl.BlockSpec((tm, H_pad), lambda i, j: (i, 0)),
            scratch_shapes=[pltpu.VMEM((tm, H_pad), jnp.float32)],
        ),
        compiler_params=pltpu.CompilerParams(**compiler_kwargs),
    )(x2d, wgu, wd_t)

    return out2d[:T, :H].reshape(B, S, H)


def expert_mlp_ref(x, w_gate, w_up, w_down):
    g = jnp.einsum("bsh,ih->bsi", x, w_gate)
    u = jnp.einsum("bsh,ih->bsi", x, w_up)
    h = jax.nn.silu(g) * u
    return jnp.einsum("bsi,hi->bsh", h, w_down)


if __name__ == "__main__":
    # Small shapes consistent with the module: batch=2, seq=8, hidden=32, intermediate=64
    B, S, H, I = 2, 8, 32, 64

    key = jax.random.PRNGKey(0)
    kx, kg, ku, kd = jax.random.split(key, 4)

    x = jax.random.normal(kx, (B, S, H), dtype=jnp.float32)
    # Deterministic "init" of nn.Linear weights (PyTorch layout: (out, in))
    w_gate = jax.random.normal(kg, (I, H), dtype=jnp.float32) * 0.05
    w_up   = jax.random.normal(ku, (I, H), dtype=jnp.float32) * 0.05
    w_down = jax.random.normal(kd, (H, I), dtype=jnp.float32) * 0.05

    out = expert_mlp(x, w_gate, w_up, w_down)
    out = jax.block_until_ready(out)

    ref = expert_mlp_ref(x, w_gate, w_up, w_down)
    assert out.shape == (B, S, H)
    assert jnp.allclose(out, ref, atol=2e-4, rtol=2e-4), "mismatch vs reference"

    print("KERNEL_OK")
</pallas_src>

<mosaic_0001>
module attributes {stable_mosaic.version = 11 : i64} {
  func.func @expert_mlp_kernel(%arg0: i32, %arg1: i32, %arg2: memref<256x128xf32, #tpu.memory_space<vmem>>, %arg3: memref<128x256xf32, #tpu.memory_space<vmem>>, %arg4: memref<128x128xf32, #tpu.memory_space<vmem>>, %arg5: memref<256x128xf32, #tpu.memory_space<vmem>>, %arg6: memref<256x128xf32, #tpu.memory_space<vmem>>) attributes {dimension_semantics = [#tpu.dimension_semantics<parallel>, #tpu.dimension_semantics<arbitrary>], iteration_bounds = array<i64: 1, 1>, scalar_prefetch = 0 : i64, scratch_operands = 1 : i64, tpu.core_type = #tpu.core_type<tc>, window_params = [{transform_indices = @transform_0, window_bounds = array<i64: 256, 128>}, {transform_indices = @transform_1, window_bounds = array<i64: 128, 256>}, {transform_indices = @transform_2, window_bounds = array<i64: 128, 128>}, {transform_indices = @transform_3, window_bounds = array<i64: 256, 128>}]} {
    %c0_i32 = arith.constant 0 : i32
    %0 = arith.cmpi eq, %arg1, %c0_i32 : i32
    %1 = arith.extui %0 : i1 to i32
    %c0_i32_0 = arith.constant 0 : i32
    %2 = arith.cmpi ne, %1, %c0_i32_0 : i32
    scf.if %2 {
      %cst_14 = arith.constant 0.000000e+00 : f32
      %23 = vector.broadcast %cst_14 : f32 to vector<256x128xf32>
      %c0_15 = arith.constant 0 : index
      %c0_16 = arith.constant 0 : index
      %24 = vector.load %arg6[%c0_15, %c0_16] : memref<256x128xf32, #tpu.memory_space<vmem>>, vector<256x128xf32>
      tpu.vector_store %arg6[%c0_15, %c0_16], %23 {strides = array<i32>} : memref<256x128xf32, #tpu.memory_space<vmem>>, vector<256x128xf32>,
    } else {
    }
    %c0 = arith.constant 0 : index
    %c0_1 = arith.constant 0 : index
    %3 = vector.load %arg2[%c0, %c0_1] : memref<256x128xf32, #tpu.memory_space<vmem>>, vector<256x128xf32>
    %c0_2 = arith.constant 0 : index
    %c0_3 = arith.constant 0 : index
    %4 = vector.load %arg3[%c0_2, %c0_3] : memref<128x256xf32, #tpu.memory_space<vmem>>, vector<128x256xf32>
    %cst = arith.constant dense<0.000000e+00> : vector<256x256xf32>
    %5 = tpu.matmul %3, %4, %cst {dimension_numbers = #tpu.dot_dimension_numbers<[1], [0], [0], [1], [0, 0, 1, 1], [], []>} : vector<256x128xf32>, vector<128x256xf32>, vector<256x256xf32> -> vector<256x256xf32>
    %6 = vector.extract_strided_slice %5 {offsets = [0, 0], sizes = [256, 128], strides = [1, 1]} : vector<256x256xf32> to vector<256x128xf32>
    %7 = vector.extract_strided_slice %5 {offsets = [0, 128], sizes = [256, 128], strides = [1, 1]} : vector<256x256xf32> to vector<256x128xf32>
    %8 = arith.negf %6 : vector<256x128xf32>
    %9 = math.exp %8 : vector<256x128xf32>
    %cst_4 = arith.constant 1.000000e+00 : f32
    %10 = vector.broadcast %cst_4 : f32 to vector<256x128xf32>
    %11 = arith.addf %10, %9 : vector<256x128xf32>
    %12 = arith.divf %10, %11 : vector<256x128xf32>
    %13 = arith.mulf %6, %12 : vector<256x128xf32>
    %14 = arith.mulf %13, %7 : vector<256x128xf32>
    %c0_5 = arith.constant 0 : index
    %c0_6 = arith.constant 0 : index
    %15 = vector.load %arg6[%c0_5, %c0_6] : memref<256x128xf32, #tpu.memory_space<vmem>>, vector<256x128xf32>
    %c0_7 = arith.constant 0 : index
    %c0_8 = arith.constant 0 : index
    %16 = vector.load %arg4[%c0_7, %c0_8] : memref<128x128xf32, #tpu.memory_space<vmem>>, vector<128x128xf32>
    %cst_9 = arith.constant dense<0.000000e+00> : vector<256x128xf32>
    %17 = tpu.matmul %14, %16, %cst_9 {dimension_numbers = #tpu.dot_dimension_numbers<[1], [0], [0], [1], [0, 0, 1, 1], [], []>} : vector<256x128xf32>, vector<128x128xf32>, vector<256x128xf32> -> vector<256x128xf32>
    %18 = arith.addf %15, %17 : vector<256x128xf32>
    %c0_10 = arith.constant 0 : index
    %c0_11 = arith.constant 0 : index
    %19 = vector.load %arg6[%c0_10, %c0_11] : memref<256x128xf32, #tpu.memory_space<vmem>>, vector<256x128xf32>
    tpu.vector_store %arg6[%c0_10, %c0_11], %18 {strides = array<i32>} : memref<256x128xf32, #tpu.memory_space<vmem>>, vector<256x128xf32>,
    %c0_i32_12 = arith.constant 0 : i32
    %20 = arith.cmpi eq, %arg1, %c0_i32_12 : i32
    %21 = arith.extui %20 : i1 to i32
    %c0_i32_13 = arith.constant 0 : i32
    %22 = arith.cmpi ne, %21, %c0_i32_13 : i32
    scf.if %22 {
      %c0_14 = arith.constant 0 : index
      %c0_15 = arith.constant 0 : index
      %23 = vector.load %arg6[%c0_14, %c0_15] : memref<256x128xf32, #tpu.memory_space<vmem>>, vector<256x128xf32>
      %c0_16 = arith.constant 0 : index
      %c0_17 = arith.constant 0 : index
      %24 = vector.load %arg5[%c0_16, %c0_17] : memref<256x128xf32, #tpu.memory_space<vmem>>, vector<256x128xf32>
      tpu.vector_store %arg5[%c0_16, %c0_17], %23 {strides = array<i32>} : memref<256x128xf32, #tpu.memory_space<vmem>>, vector<256x128xf32>,
    } else {
    }
    return
  }
  func.func @transform_0(%arg0: i32, %arg1: i32) -> (i32, i32) {
    %c0_i32 = arith.constant 0 : i32
    %c0_i32_0 = arith.constant 0 : i32
    return %arg0, %c0_i32 : i32, i32
  }
  func.func @transform_1(%arg0: i32, %arg1: i32) -> (i32, i32) {
    %c0_i32 = arith.constant 0 : i32
    %c0_i32_0 = arith.constant 0 : i32
    return %c0_i32, %arg1 : i32, i32
  }
  func.func @transform_2(%arg0: i32, %arg1: i32) -> (i32, i32) {
    %c0_i32 = arith.constant 0 : i32
    %c0_i32_0 = arith.constant 0 : i32
    return %arg1, %c0_i32 : i32, i32
  }
  func.func @transform_3(%arg0: i32, %arg1: i32) -> (i32, i32) {
    %c0_i32 = arith.constant 0 : i32
    %c0_i32_0 = arith.constant 0 : i32
    return %arg0, %c0_i32 : i32, i32
  }
}

</mosaic_0001>

<bundles_post_ra>
// kernel: tpu_custom_call.1
= control target key start
LH: loop header
LB: loop body
LE: loop exit
PB: predicated region body
PF: predicated region fallthrough
CT: control target
= control target key end

     0   :  { %8 = vsyncpa [#allocation4], 0  ;;  %s1788_s0 = inlined_call_operand.hbm [shape: f32[256,128], index: 0, kind: input, shape index: {}]   ;;  %s1789_s1 = inlined_call_operand.hbm [shape: f32[128,256], index: 1, kind: input, shape index: {}]   ;;  %s1790_s2 = inlined_call_operand.hbm [shape: f32[128,128], index: 2, kind: input, shape index: {}]   ;;  %s1791_s3 = inlined_call_operand.hbm [shape: f32[256,128], index: 3, kind: output, shape index: {}]  }
   0x1   :  { %9 = vsyncpa [#allocation7], 0 }
   0x2   :  { %10 = vsyncpa [#allocation5], 0  ;;  %s1506_s12 = smov [#allocation6]  }
   0x3   :  { %s28_s13 = sshll.u32 %s1506_s12, 4  ;;  %s29_s13 = int_to_ptr.vmem [resolvable:$true] %s28_s13 }
   0x4   :  { %s1428_s14 = scalar_lea.vmem %s29_s13, 4096  ;;  %p1433_p1 = scmp.lt.s32.totalorder %s29_s13, %s29_s13 }
   0x5   :  { %p1429_p0 = scmp.ne.s32.totalorder %s29_s13, %s1428_s14  ;;  %p1434_p2 = scmp.lt.s32.totalorder %s1428_s14, %s1428_s14 }
   0x7   :  { %p1435_p3 = por %p1434_p2, %p1433_p1 }
   0x9   :  { %p1436_p4 = pnand %p1435_p3, %p1429_p0 }
   0xb   :  { %1439 = shalt.err (!%p1436_p4)
}
   0xc   :  { %s1507_s15 = smov 256   ;;  %s1508_s16 = smov 16  }
   0xd   :  { %34 = dma.hbm_to_vmem [thread:$0]  %s1789_s1, 4096, %s29_s13, [#allocation7], %s1507_s15, %s1507_s15, %s1508_s16  }
   0xe   :  { %s1509_s19 = smov [#allocation3]  }
   0xf   :  { %s16_s20 = sshll.u32 %s1509_s19, 4  ;;  %s17_s20 = int_to_ptr.vmem [resolvable:$true] %s16_s20 }
  0x10   :  { %s1448_s21 = scalar_lea.vmem %s17_s20, 4096  ;;  %p1453_p6 = scmp.lt.s32.totalorder %s17_s20, %s17_s20 }
  0x11   :  { %p1449_p5 = scmp.ne.s32.totalorder %s17_s20, %s1448_s21  ;;  %p1454_p7 = scmp.lt.s32.totalorder %s1448_s21, %s1448_s21 }
  0x13   :  { %p1455_p8 = por %p1454_p7, %p1453_p6 }
  0x15   :  { %p1456_p9 = pnand %p1455_p8, %p1449_p5 }
  0x17   :  { %1459 = shalt.err (!%p1456_p9)
}
  0x18   :  { %s1510_s22 = smov 128   ;;  %s1511_s23 = smov 8  }
  0x19   :  { %22 = dma.hbm_to_vmem [thread:$0]  %s1788_s0, 4096, %s17_s20, [#allocation4], %s1510_s22, %s1510_s22, %s1511_s23  }
  0x1a   :  { %s1512_s1 = smov [#allocation8]  }
  0x1b   :  { %s40_s26 = sshll.u32 %s1512_s1, 4  ;;  %s41_s26 = int_to_ptr.vmem [resolvable:$true] %s40_s26 }
  0x1c   :  { %s1468_s27 = scalar_lea.vmem %s41_s26, 2048  ;;  %p1473_p11 = scmp.lt.s32.totalorder %s41_s26, %s41_s26 }
  0x1d   :  { %p1469_p10 = scmp.ne.s32.totalorder %s41_s26, %s1468_s27  ;;  %p1474_p12 = scmp.lt.s32.totalorder %s1468_s27, %s1468_s27 }
  0x1f   :  { %p1475_p13 = por %p1474_p12, %p1473_p11 }
  0x21   :  { %p1476_p0 = pnand %p1475_p13, %p1469_p10 }
  0x23   :  { %1479 = shalt.err (!%p1476_p0)
}
  0x24   :  { %46 = dma.hbm_to_vmem [thread:$0]  %s1790_s2, 2048, %s41_s26, [#allocation7], %s1510_s22, %s1510_s22, %s1511_s23  }
  0x25   :  { %1500 = dma.done.wait [#allocation4], 4096  }
  0x26   :  { %1501 = vsyncadd [#allocation4], 4294963200 }
  0x27   :  { %1502 = dma.done.wait [#allocation7], 6144  }
  0x28   :  { %1503 = vsyncadd [#allocation7], 4294961152  ;;  %v1513_v0 = vmov 0.0   ;;  %v155_v1 = vld [vmem:[#allocation6 + $0xf8] sm:$0xff]  ;;  %v154_v2 = vld [vmem:[#allocation6 + $0xf0] sm:$0xff]  ;;  %s1514_s0 = smov [#allocation9]  }
  0x29   :  { %220 = vmatprep.mubr.f32.mxu0 %v1513_v0  ;;  %364 = vmatprep.mubr.f32.mxu1 %v1513_v0  ;;  %v153_v3 = vld [vmem:[#allocation6 + $0xe8] sm:$0xff]  ;;  %v152_v4 = vld [vmem:[#allocation6 + $0xe0] sm:$0xff]  ;;  %v151_v5 = vld [vmem:[#allocation6 + $0xd8] sm:$0xff]  ;;  %s1078_s2 = sshll.u32 %s1514_s0, 4  ;;  %s1079_s2 = int_to_ptr.vmem [resolvable:$true] %s1078_s2 }
  0x2a   :  { %156 = vmatprep.subr.mxu0 %v155_v1  ;;  %1251 = vmatprep.subr.mxu1 %v155_v1  ;;  %v150_v6 = vld [vmem:[#allocation6 + $0xd0] sm:$0xff]  ;;  %v149_v7 = vld [vmem:[#allocation6 + $0xc8] sm:$0xff]  ;;  %v148_v8 = vld [vmem:[#allocation6 + $0xc0] sm:$0xff]  ;;  %s1480_s30 = scalar_lea.vmem %s1079_s2, 4096  ;;  %p1485_p2 = scmp.lt.s32.totalorder %s1079_s2, %s1079_s2 }
  0x2b   :  { %157 = vmatpush1.msra.mxu0 %v154_v2  ;;  %1267 = vmatpush1.msra.mxu1 %v154_v2  ;;  %v147_v9 = vld [vmem:[#allocation6 + $0xb8] sm:$0xff]  ;;  %v146_v10 = vld [vmem:[#allocation6 + $0xb0] sm:$0xff]  ;;  %v145_v11 = vld [vmem:[#allocation6 + $0xa8] sm:$0xff]  ;;  %p1481_p1 = scmp.ne.s32.totalorder %s1079_s2, %s1480_s30  ;;  %p1486_p3 = scmp.lt.s32.totalorder %s1480_s30, %s1480_s30 }
  0x2c   :  { %158 = vmatprep.subr.mxu0 %v153_v3  ;;  %1252 = vmatprep.subr.mxu1 %v153_v3  ;;  %v144_v12 = vld [vmem:[#allocation6 + $0xa0] sm:$0xff]  ;;  %v143_v13 = vld [vmem:[#allocation6 + $0x98] sm:$0xff]  ;;  %v142_v14 = vld [vmem:[#allocation6 + $0x90] sm:$0xff] }
  0x2d   :  { %159 = vmatpush1.msra.mxu0 %v152_v4  ;;  %1268 = vmatpush1.msra.mxu1 %v152_v4  ;;  %v141_v15 = vld [vmem:[#allocation6 + $0x88] sm:$0xff]  ;;  %v140_v16 = vld [vmem:[#allocation6 + $0x80] sm:$0xff]  ;;  %v139_v17 = vld [vmem:[#allocation6 + $0x78] sm:$0xff]  ;;  %p1487_p4 = por %p1486_p3, %p1485_p2 }
  0x2e   :  { %160 = vmatprep.subr.mxu0 %v151_v5  ;;  %1253 = vmatprep.subr.mxu1 %v151_v5  ;;  %v138_v18 = vld [vmem:[#allocation6 + $0x70] sm:$0xff]  ;;  %v137_v19 = vld [vmem:[#allocation6 + $0x68] sm:$0xff]  ;;  %v136_v20 = vld [vmem:[#allocation6 + $0x60] sm:$0xff] }
  0x2f   :  { %161 = vmatpush1.msra.mxu0 %v150_v6  ;;  %1269 = vmatpush1.msra.mxu1 %v150_v6  ;;  %v135_v21 = vld [vmem:[#allocation6 + $0x58] sm:$0xff]  ;;  %v134_v22 = vld [vmem:[#allocation6 + $0x50] sm:$0xff]  ;;  %v133_v23 = vld [vmem:[#allocation6 + $0x48] sm:$0xff]  ;;  %p1488_p5 = pnand %p1487_p4, %p1481_p1 }
  0x30   :  { %162 = vmatprep.subr.mxu0 %v149_v7  ;;  %1254 = vmatprep.subr.mxu1 %v149_v7  ;;  %v132_v24 = vld [vmem:[#allocation6 + $0x40] sm:$0xff]  ;;  %v131_v25 = vld [vmem:[#allocation6 + $0x38] sm:$0xff]  ;;  %v130_v26 = vld [vmem:[#allocation6 + $0x30] sm:$0xff] }
  0x31   :  { %163 = vmatpush1.msra.mxu0 %v148_v8  ;;  %1270 = vmatpush1.msra.mxu1 %v148_v8  ;;  %v129_v27 = vld [vmem:[#allocation6 + $0x28] sm:$0xff]  ;;  %v128_v28 = vld [vmem:[#allocation6 + $0x20] sm:$0xff]  ;;  %v127_v29 = vld [vmem:[#allocation6 + $0x18] sm:$0xff] }
  0x32   :  { %164 = vmatprep.subr.mxu0 %v147_v9  ;;  %1255 = vmatprep.subr.mxu1 %v147_v9  ;;  %v126_v30 = vld [vmem:[#allocation6 + $0x10] sm:$0xff]  ;;  %v125_v31 = vld [vmem:[#allocation6 + $0x8] sm:$0xff]  ;;  %v124_v32 = vld [vmem:[#allocation6] sm:$0xff] }
  0x33   :  { %165 = vmatpush1.msra.mxu0 %v146_v10  ;;  %1271 = vmatpush1.msra.mxu1 %v146_v10  ;;  %v92_v33 = vld [vmem:[#allocation3] sm:$0xff]  ;;  %v93_v35 = vld [vmem:[#allocation3 + $0x8] sm:$0xff]  ;;  %v94_v37 = vld [vmem:[#allocation3 + $0x10] sm:$0xff] }
  0x34   :  { %166 = vmatprep.subr.mxu0 %v145_v11  ;;  %1256 = vmatprep.subr.mxu1 %v145_v11  ;;  %v116_v34 = vld [vmem:[#allocation3 + $0xc0] sm:$0xff]  ;;  %v117_v36 = vld [vmem:[#allocation3 + $0xc8] sm:$0xff]  ;;  %v118_v38 = vld [vmem:[#allocation3 + $0xd0] sm:$0xff] }
  0x35   :  { %167 = vmatpush1.msra.mxu0 %v144_v12  ;;  %1272 = vmatpush1.msra.mxu1 %v144_v12  ;;  %v95_v39 = vld [vmem:[#allocation3 + $0x18] sm:$0xff]  ;;  %v96_v41 = vld [vmem:[#allocation3 + $0x20] sm:$0xff]  ;;  %v97_v43 = vld [vmem:[#allocation3 + $0x28] sm:$0xff] }
  0x36   :  { %168 = vmatprep.subr.mxu0 %v143_v13  ;;  %1257 = vmatprep.subr.mxu1 %v143_v13  ;;  %v119_v40 = vld [vmem:[#allocation3 + $0xd8] sm:$0xff]  ;;  %v120_v42 = vld [vmem:[#allocation3 + $0xe0] sm:$0xff]  ;;  %v121_v44 = vld [vmem:[#allocation3 + $0xe8] sm:$0xff] }
  0x37   :  { %169 = vmatpush1.msra.mxu0 %v142_v14  ;;  %1273 = vmatpush1.msra.mxu1 %v142_v14  ;;  %v98_v45 = vld [vmem:[#allocation3 + $0x30] sm:$0xff]  ;;  %v99_v47 = vld [vmem:[#allocation3 + $0x38] sm:$0xff]  ;;  %v100_v49 = vld [vmem:[#allocation3 + $0x40] sm:$0xff] }
  0x38   :  { %170 = vmatprep.subr.mxu0 %v141_v15  ;;  %1258 = vmatprep.subr.mxu1 %v141_v15  ;;  %v122_v46 = vld [vmem:[#allocation3 + $0xf0] sm:$0xff]  ;;  %v123_v48 = vld [vmem:[#allocation3 + $0xf8] sm:$0xff]  ;;  %v101_v50 = vld [vmem:[#allocation3 + $0x48] sm:$0xff] }
  0x39   :  { %171 = vmatpush1.msra.mxu0 %v140_v16  ;;  %1274 = vmatpush1.msra.mxu1 %v140_v16  ;;  %v102_v51 = vld [vmem:[#allocation3 + $0x50] sm:$0xff]  ;;  %v103_v52 = vld [vmem:[#allocation3 + $0x58] sm:$0xff]  ;;  %v104_v53 = vld [vmem:[#allocation3 + $0x60] sm:$0xff] }
  0x3a   :  { %172 = vmatprep.subr.mxu0 %v139_v17  ;;  %1259 = vmatprep.subr.mxu1 %v139_v17  ;;  %v105_v54 = vld [vmem:[#allocation3 + $0x68] sm:$0xff]  ;;  %v106_v55 = vld [vmem:[#allocation3 + $0x70] sm:$0xff]  ;;  %v107_v56 = vld [vmem:[#allocation3 + $0x78] sm:$0xff] }
  0x3b   :  { %173 = vmatpush1.msra.mxu0 %v138_v18  ;;  %1275 = vmatpush1.msra.mxu1 %v138_v18  ;;  %v108_v57 = vld [vmem:[#allocation3 + $0x80] sm:$0xff]  ;;  %v109_v58 = vld [vmem:[#allocation3 + $0x88] sm:$0xff]  ;;  %v110_v59 = vld [vmem:[#allocation3 + $0x90] sm:$0xff] }
  0x3c   :  { %174 = vmatprep.subr.mxu0 %v137_v19  ;;  %1260 = vmatprep.subr.mxu1 %v137_v19  ;;  %v716_v60 = vld [vmem:[#allocation8 + $0x78] sm:$0xff]  ;;  %v715_v62 = vld [vmem:[#allocation8 + $0x70] sm:$0xff]  ;;  %v714_v63 = vld [vmem:[#allocation8 + $0x68] sm:$0xff] }
  0x3d   :  { %175 = vmatpush1.msra.mxu0 %v136_v20  ;;  %1276 = vmatpush1.msra.mxu1 %v136_v20  ;;  %v111_v61 = vld [vmem:[#allocation3 + $0x98] sm:$0xff]  ;;  %v112_v1 = vld [vmem:[#allocation3 + $0xa0] sm:$0xff]  ;;  %v113_v3 = vld [vmem:[#allocation3 + $0xa8] sm:$0xff] }
  0x3e   :  { %176 = vmatprep.subr.mxu0 %v135_v21  ;;  %1261 = vmatprep.subr.mxu1 %v135_v21  ;;  %v713_v2 = vld [vmem:[#allocation8 + $0x60] sm:$0xff]  ;;  %v712_v4 = vld [vmem:[#allocation8 + $0x58] sm:$0xff]  ;;  %v711_v5 = vld [vmem:[#allocation8 + $0x50] sm:$0xff] }
  0x3f   :  { %177 = vmatpush1.msra.mxu0 %v134_v22  ;;  %1277 = vmatpush1.msra.mxu1 %v134_v22  ;;  %v114_v6 = vld [vmem:[#allocation3 + $0xb0] sm:$0xff]  ;;  %v710_v7 = vld [vmem:[#allocation8 + $0x48] sm:$0xff]  ;;  %v709_v8 = vld [vmem:[#allocation8 + $0x40] sm:$0xff] }
  0x40   :  { %178 = vmatprep.subr.mxu0 %v133_v23  ;;  %1262 = vmatprep.subr.mxu1 %v133_v23  ;;  %v115_v9 = vld [vmem:[#allocation3 + $0xb8] sm:$0xff]  ;;  %v707_v11 = vld [vmem:[#allocation8 + $0x30] sm:$0xff]  ;;  %v706_v12 = vld [vmem:[#allocation8 + $0x28] sm:$0xff] }
  0x41   :  { %179 = vmatpush1.msra.mxu0 %v132_v24  ;;  %1278 = vmatpush1.msra.mxu1 %v132_v24  ;;  %v708_v10 = vld [vmem:[#allocation8 + $0x38] sm:$0xff]  ;;  %v705_v13 = vld [vmem:[#allocation8 + $0x20] sm:$0xff]  ;;  %v703_v15 = vld [vmem:[#allocation8 + $0x10] sm:$0xff] }
  0x42   :  { %180 = vmatprep.subr.mxu0 %v131_v25  ;;  %1263 = vmatprep.subr.mxu1 %v131_v25  ;;  %v704_v14 = vld [vmem:[#allocation8 + $0x18] sm:$0xff]  ;;  %v701_v16 = vld [vmem:[#allocation8] sm:$0xff] }
  0x43   :  { %181 = vmatpush1.msra.mxu0 %v130_v26  ;;  %1279 = vmatpush1.msra.mxu1 %v130_v26 }
  0x44   :  { %182 = vmatprep.subr.mxu0 %v129_v27  ;;  %1264 = vmatprep.subr.mxu1 %v129_v27 }
  0x45   :  { %183 = vmatpush1.msra.mxu0 %v128_v28  ;;  %1280 = vmatpush1.msra.mxu1 %v128_v28 }
  0x46   :  { %184 = vmatprep.subr.mxu0 %v127_v29  ;;  %1265 = vmatprep.subr.mxu1 %v127_v29 }
  0x47   :  { %185 = vmatpush1.msra.mxu0 %v126_v30  ;;  %1281 = vmatpush1.msra.mxu1 %v126_v30 }
  0x48   :  { %186 = vmatprep.subr.mxu0 %v125_v31  ;;  %1266 = vmatprep.subr.mxu1 %v125_v31 }
  0x49   :  { %187 = vmatpush1.msra.mxu0 %v124_v32  ;;  %1282 = vmatpush1.msra.mxu1 %v124_v32 }
  0x4a   :  { %221 = vmatmul.mubr.f32.vlgmr.msra.gmra.mxu0 %v92_v33  ;;  %365 = vmatmul.mubr.f32.vlgmr.msra.gmra.mxu1 %v116_v34 }
  0x4b   :  { %226 = vmatprep.mubr.f32.mxu0 %v1513_v0  ;;  %370 = vmatprep.mubr.f32.mxu1 %v1513_v0 }
  0x4c   :  { %1171 = vmatprep.subr.mxu1 %v716_v60 }
  0x4d   :  { %1172 = vmatpush3.msra.mxu1 %v716_v60 }
  0x4e   :  { %227 = vmatmul.mubr.f32.gmra.mxu0 %v93_v35  ;;  %371 = vmatmul.mubr.f32.gmra.mxu1 %v117_v36 }
  0x4f   :  { %232 = vmatprep.mubr.f32.mxu0 %v1513_v0  ;;  %376 = vmatprep.mubr.f32.mxu1 %v1513_v0 }
  0x50   :  { %1173 = vmatprep.subr.mxu1 %v715_v62 }
  0x51   :  { %1174 = vmatpush3.msra.mxu1 %v715_v62 }
  0x52   :  { %233 = vmatmul.mubr.f32.gmra.mxu0 %v94_v37  ;;  %377 = vmatmul.mubr.f32.gmra.mxu1 %v118_v38 }
  0x53   :  { %238 = vmatprep.mubr.f32.mxu0 %v1513_v0  ;;  %382 = vmatprep.mubr.f32.mxu1 %v1513_v0 }
  0x54   :  { %1175 = vmatprep.subr.mxu1 %v714_v63 }
  0x55   :  { %1176 = vmatpush3.msra.mxu1 %v714_v63 }
  0x56   :  { %239 = vmatmul.mubr.f32.gmra.mxu0 %v95_v39  ;;  %383 = vmatmul.mubr.f32.gmra.mxu1 %v119_v40 }
  0x57   :  { %244 = vmatprep.mubr.f32.mxu0 %v1513_v0  ;;  %388 = vmatprep.mubr.f32.mxu1 %v1513_v0 }
  0x58   :  { %1177 = vmatprep.subr.mxu1 %v713_v2 }
  0x59   :  { %1178 = vmatpush3.msra.mxu1 %v713_v2 }
  0x5a   :  { %245 = vmatmul.mubr.f32.gmra.mxu0 %v96_v41  ;;  %389 = vmatmul.mubr.f32.gmra.mxu1 %v120_v42 }
  0x5b   :  { %250 = vmatprep.mubr.f32.mxu0 %v1513_v0  ;;  %394 = vmatprep.mubr.f32.mxu1 %v1513_v0 }
  0x5c   :  { %1179 = vmatprep.subr.mxu1 %v712_v4 }
  0x5d   :  { %1180 = vmatpush3.msra.mxu1 %v712_v4 }
  0x5e   :  { %251 = vmatmul.mubr.f32.gmra.mxu0 %v97_v43  ;;  %395 = vmatmul.mubr.f32.gmra.mxu1 %v121_v44 }
  0x5f   :  { %256 = vmatprep.mubr.f32.mxu0 %v1513_v0  ;;  %400 = vmatprep.mubr.f32.mxu1 %v1513_v0 }
  0x60   :  { %1181 = vmatprep.subr.mxu1 %v711_v5 }
  0x61   :  { %1182 = vmatpush3.msra.mxu1 %v711_v5 }
  0x62   :  { %257 = vmatmul.mubr.f32.gmra.mxu0 %v98_v45  ;;  %401 = vmatmul.mubr.f32.gmra.mxu1 %v122_v46 }
  0x63   :  { %262 = vmatprep.mubr.f32.mxu0 %v1513_v0  ;;  %406 = vmatprep.mubr.f32.mxu1 %v1513_v0 }
  0x64   :  { %1183 = vmatprep.subr.mxu1 %v710_v7 }
  0x65   :  { %1184 = vmatpush3.msra.mxu1 %v710_v7 }
  0x66   :  { %263 = vmatmul.mubr.f32.gmra.mxu0 %v99_v47  ;;  %407 = vmatmul.mubr.f32.gmra.mxu1 %v123_v48 }
  0x67   :  { %268 = vmatprep.mubr.f32.mxu0 %v1513_v0  ;;  %1185 = vmatprep.subr.mxu1 %v709_v8 }
  0x68   :  { %1186 = vmatpush3.msra.mxu1 %v709_v8 }
  0x69   :  { %1187 = vmatprep.subr.mxu1 %v708_v10 }
  0x6a   :  { %269 = vmatmul.mubr.f32.gmra.mxu0 %v100_v49  ;;  %1188 = vmatpush3.msra.mxu1 %v708_v10 }
  0x6b   :  { %274 = vmatprep.mubr.f32.mxu0 %v1513_v0  ;;  %1189 = vmatprep.subr.mxu1 %v707_v11 }
  0x6c   :  { %1190 = vmatpush3.msra.mxu1 %v707_v11 }
  0x6d   :  { %1191 = vmatprep.subr.mxu1 %v706_v12 }
  0x6e   :  { %275 = vmatmul.mubr.f32.gmra.mxu0 %v101_v50  ;;  %1192 = vmatpush3.msra.mxu1 %v706_v12 }
  0x6f   :  { %280 = vmatprep.mubr.f32.mxu0 %v1513_v0  ;;  %1193 = vmatprep.subr.mxu1 %v705_v13 }
  0x70   :  { %1194 = vmatpush3.msra.mxu1 %v705_v13 }
  0x71   :  { %1195 = vmatprep.subr.mxu1 %v704_v14 }
  0x72   :  { %281 = vmatmul.mubr.f32.gmra.mxu0 %v102_v51  ;;  %1196 = vmatpush3.msra.mxu1 %v704_v14 }
  0x73   :  { %286 = vmatprep.mubr.f32.mxu0 %v1513_v0  ;;  %1197 = vmatprep.subr.mxu1 %v703_v15 }
  0x74   :  { %1198 = vmatpush3.msra.mxu1 %v703_v15 }
  0x76   :  { %287 = vmatmul.mubr.f32.gmra.mxu0 %v103_v52 }
  0x77   :  { %292 = vmatprep.mubr.f32.mxu0 %v1513_v0 }
  0x7a   :  { %293 = vmatmul.mubr.f32.gmra.mxu0 %v104_v53 }
  0x7b   :  { %298 = vmatprep.mubr.f32.mxu0 %v1513_v0 }
  0x7e   :  { %299 = vmatmul.mubr.f32.gmra.mxu0 %v105_v54 }
  0x7f   :  { %304 = vmatprep.mubr.f32.mxu0 %v1513_v0 }
  0x82   :  { %305 = vmatmul.mubr.f32.gmra.mxu0 %v106_v55 }
  0x83   :  { %310 = vmatprep.mubr.f32.mxu0 %v1513_v0 }
  0x86   :  { %311 = vmatmul.mubr.f32.gmra.mxu0 %v107_v56 }
  0x87   :  { %316 = vmatprep.mubr.f32.mxu0 %v1513_v0 }
  0x8a   :  { %317 = vmatmul.mubr.f32.gmra.mxu0 %v108_v57 }
  0x8b   :  { %322 = vmatprep.mubr.f32.mxu0 %v1513_v0 }
  0x8e   :  { %323 = vmatmul.mubr.f32.gmra.mxu0 %v109_v58 }
  0x8f   :  { %328 = vmatprep.mubr.f32.mxu0 %v1513_v0 }
  0x92   :  { %329 = vmatmul.mubr.f32.gmra.mxu0 %v110_v59 }
  0x93   :  { %334 = vmatprep.mubr.f32.mxu0 %v1513_v0 }
  0x96   :  { %335 = vmatmul.mubr.f32.gmra.mxu0 %v111_v61 }
  0x97   :  { %340 = vmatprep.mubr.f32.mxu0 %v1513_v0 }
  0x9a   :  { %341 = vmatmul.mubr.f32.gmra.mxu0 %v112_v1 }
  0x9b   :  { %346 = vmatprep.mubr.f32.mxu0 %v1513_v0 }
  0x9e   :  { %347 = vmatmul.mubr.f32.gmra.mxu0 %v113_v3 }
  0x9f   :  { %352 = vmatprep.mubr.f32.mxu0 %v1513_v0 }
  0xa2   :  { %353 = vmatmul.mubr.f32.gmra.mxu0 %v114_v6 }
  0xa3   :  { %358 = vmatprep.mubr.f32.mxu0 %v1513_v0  ;;  %v702_v0 = vld [vmem:[#allocation8 + $0x8] sm:$0xff] }
  0xa4   :  { %1199 = vmatprep.subr.mxu1 %v702_v0 }
  0xa5   :  { %1200 = vmatpush3.msra.mxu1 %v702_v0 }
  0xa6   :  { %359 = vmatmul.mubr.f32.gmra.mxu0 %v115_v9  ;;  %1201 = vmatprep.subr.mxu1 %v701_v16 }
  0xa7   :  { %1202 = vmatpush3.msra.mxu1 %v701_v16 }
 0x10a   :  { %v222_v17 = vpop.f32.mrf.mxu0  ;;  %v1621_v4 = vpop.f32.mrf.mxu1 }
 0x10b   :  { %v1091_v18 = vmul.f32 -1.442695, %v222_v17 }
 0x10c   :  { %v224_v19 = vpop.f32.mrf.mxu0  ;;  %v1629_v13 = vpop.f32.mrf.mxu1 }
 0x10d   :  { %1292 = vpow2.f32 %v1091_v18 }
 0x10e   :  { %v228_v20 = vpop.f32.mrf.mxu0 }
 0x10f   :  { %v1092_v21 = vmul.f32 -1.442695, %v228_v20 }
 0x110   :  { %v230_v22 = vpop.f32.mrf.mxu0 }
 0x111   :  { %1294 = vpow2.f32 %v1092_v21  ;;  %v1638_v21 = vpop.f32.mrf.mxu1 }
 0x112   :  { %v234_v23 = vpop.f32.mrf.mxu0 }
 0x113   :  { %v1093_v24 = vmul.f32 -1.442695, %v234_v23 }
 0x114   :  { %v1582_v25 = vpop.f32.mrf.mxu0 }
 0x115   :  { %1296 = vpow2.f32 %v1093_v24 }
 0x116   :  { %v1584_v26 = vpop.f32.mrf.mxu0 }
 0x117   :  { %v1094_v27 = vmul.f32 -1.442695, %v1584_v26 }
 0x118   :  { %v1587_v28 = vpop.f32.mrf.mxu0 }
 0x119   :  { %1298 = vpow2.f32 %v1094_v27 }
 0x11a   :  { %v1293_v29 = vpop.eup %1292  ;;  %v1589_v30 = vpop.f32.mrf.mxu0 }
 0x11b   :  { %v509_v31 = vadd.f32 1.0, %v1293_v29  ;;  %v1095_v32 = vmul.f32 -1.442695, %v1589_v30 }
 0x11c   :  { %v1592_v33 = vpop.f32.mrf.mxu0 }
 0x11d   :  { %1300 = vrcp.f32 %v509_v31  ;;  %v1647_v31 = vpop.f32.mrf.mxu1 }
 0x11e   :  { %v1295_v34 = vpop.eup %1294  ;;  %1302 = vpow2.f32 %v1095_v32  ;;  %v1594_v35 = vpop.f32.mrf.mxu0 }
 0x11f   :  { %v510_v36 = vadd.f32 1.0, %v1295_v34  ;;  %v1096_v37 = vmul.f32 -1.442695, %v1594_v35 }
 0x120   :  { %v1597_v38 = vpop.f32.mrf.mxu0 }
 0x121   :  { %1304 = vrcp.f32 %v510_v36 }
 0x122   :  { %v1297_v39 = vpop.eup %1296  ;;  %1306 = vpow2.f32 %v1096_v37  ;;  %v1599_v40 = vpop.f32.mrf.mxu0 }
 0x123   :  { %v511_v41 = vadd.f32 1.0, %v1297_v39  ;;  %v1097_v42 = vmul.f32 -1.442695, %v1599_v40 }
 0x124   :  { %v1602_v43 = vpop.f32.mrf.mxu0 }
 0x125   :  { %1308 = vrcp.f32 %v511_v41 }
 0x126   :  { %v1299_v44 = vpop.eup %1298  ;;  %1310 = vpow2.f32 %v1097_v42  ;;  %v1604_v45 = vpop.f32.mrf.mxu0 }
 0x127   :  { %v512_v46 = vadd.f32 1.0, %v1299_v44  ;;  %v1098_v47 = vmul.f32 -1.442695, %v1604_v45 }
 0x128   :  { %v1607_v48 = vpop.f32.mrf.mxu0 }
 0x129   :  { %1312 = vrcp.f32 %v512_v46 }
 0x12a   :  { %v1301_v49 = vpop.eup %1300  ;;  %1314 = vpow2.f32 %v1098_v47  ;;  %v1609_v50 = vpop.f32.mrf.mxu0 }
 0x12b   :  { %v1303_v51 = vpop.eup %1302  ;;  %v605_v52 = vmul.f32 %v1301_v49, %v222_v17  ;;  %v1099_v53 = vmul.f32 -1.442695, %v1609_v50 }
 0x12c   :  { %v513_v54 = vadd.f32 1.0, %v1303_v51  ;;  %v1612_v55 = vpop.f32.mrf.mxu0 }
 0x12d   :  { %v637_v56 = vmul.f32 %v605_v52, %v224_v19  ;;  %1316 = vpow2.f32 %v1099_v53 }
 0x12e   :  { %v1305_v57 = vpop.eup %1304  ;;  %1318 = vrcp.f32 %v513_v54  ;;  %v1614_v58 = vpop.f32.mrf.mxu0 }
 0x12f   :  { %v1307_v59 = vpop.eup %1306  ;;  %v606_v60 = vmul.f32 %v1305_v57, %v228_v20  ;;  %v1100_v61 = vmul.f32 -1.442695, %v1614_v58  ;;  %1203 = vmatprep.mubr.f32.mxu1 %v637_v56 }
 0x130   :  { %v514_v62 = vadd.f32 1.0, %v1307_v59  ;;  %v1617_v63 = vpop.f32.mrf.mxu0 }
 0x131   :  { %v638_v1 = vmul.f32 %v606_v60, %v230_v22  ;;  %1320 = vpow2.f32 %v1100_v61 }
 0x132   :  { %v1309_v2 = vpop.eup %1308  ;;  %1322 = vrcp.f32 %v514_v62  ;;  %v1619_v3 = vpop.f32.mrf.mxu0 }
 0x133   :  { %v1311_v5 = vpop.eup %1310  ;;  %v607_v6 = vmul.f32 %v1309_v2, %v234_v23  ;;  %v1101_v7 = vmul.f32 -1.442695, %v1619_v3  ;;  %1204 = vmatmul.mubr.f32.vlgmr.msra.gmra.mxu1 %v638_v1 }
 0x134   :  { %v515_v8 = vadd.f32 1.0, %v1311_v5  ;;  %v1624_v9 = vpop.f32.mrf.mxu0 }
 0x135   :  { %v639_v10 = vmul.f32 %v607_v6, %v1582_v25  ;;  %1324 = vpow2.f32 %v1101_v7 }
 0x136   :  { %v1313_v11 = vpop.eup %1312  ;;  %1326 = vrcp.f32 %v515_v8  ;;  %v1627_v12 = vpop.f32.mrf.mxu0 }
 0x137   :  { %v1315_v14 = vpop.eup %1314  ;;  %v608_v15 = vmul.f32 %v1313_v11, %v1584_v26  ;;  %v1102_v0 = vmul.f32 -1.442695, %v1627_v12  ;;  %1206 = vmatprep.mubr.f32.mxu1 %v639_v10 }
 0x138   :  { %v516_v16 = vadd.f32 1.0, %v1315_v14  ;;  %v1633_v17 = vpop.f32.mrf.mxu0 }
 0x139   :  { %v640_v18 = vmul.f32 %v608_v15, %v1587_v28  ;;  %1328 = vpow2.f32 %v1102_v0 }
 0x13a   :  { %v1317_v19 = vpop.eup %1316  ;;  %1330 = vrcp.f32 %v516_v16  ;;  %v1636_v20 = vpop.f32.mrf.mxu0 }
 0x13b   :  { %v1319_v22 = vpop.eup %1318  ;;  %v517_v23 = vadd.f32 1.0, %v1317_v19  ;;  %v1103_v24 = vmul.f32 -1.442695, %v1636_v20  ;;  %1207 = vmatmul.mubr.f32.gmra.mxu1 %v640_v18 }
 0x13c   :  { %v609_v25 = vmul.f32 %v1319_v22, %v1589_v30  ;;  %v1642_v26 = vpop.f32.mrf.mxu0 }
 0x13d   :  { %1332 = vrcp.f32 %v517_v23 }
 0x13e   :  { %v1321_v27 = vpop.eup %1320  ;;  %v641_v28 = vmul.f32 %v609_v25, %v1592_v33  ;;  %1334 = vpow2.f32 %v1103_v24  ;;  %v1645_v29 = vpop.f32.mrf.mxu0 }
 0x13f   :  { %v1323_v32 = vpop.eup %1322  ;;  %v518_v34 = vadd.f32 1.0, %v1321_v27  ;;  %v1104_v36 = vmul.f32 -1.442695, %v1645_v29  ;;  %v1654_v33 = vpop.f32.mrf.mxu1 }
 0x140   :  { %v610_v37 = vmul.f32 %v1323_v32, %v1594_v35  ;;  %1209 = vmatprep.mubr.f32.mxu1 %v641_v28  ;;  %v1651_v39 = vpop.f32.mrf.mxu0 }
 0x141   :  { %1336 = vrcp.f32 %v518_v34 }
 0x142   :  { %v1325_v30 = vpop.eup %1324  ;;  %v642_v41 = vmul.f32 %v610_v37, %v1597_v38  ;;  %1338 = vpow2.f32 %v1104_v36  ;;  %v1656_v42 = vpop.f32.mrf.mxu0 }
 0x143   :  { %v1327_v44 = vpop.eup %1326  ;;  %v519_v46 = vadd.f32 1.0, %v1325_v30  ;;  %v1105_v47 = vmul.f32 -1.442695, %v1656_v42  ;;  %v1663_v38 = vpop.f32.mrf.mxu1 }
 0x144   :  { %v611_v49 = vmul.f32 %v1327_v44, %v1599_v40  ;;  %1210 = vmatmul.mubr.f32.gmra.mxu1 %v642_v41  ;;  %v1660_v35 = vpop.f32.mrf.mxu0 }
 0x145   :  { %1340 = vrcp.f32 %v519_v46  ;;  %v1672_v62 = vpop.f32.mrf.mxu1 }
 0x146   :  { %v1329_v51 = vpop.eup %1328  ;;  %v643_v52 = vmul.f32 %v611_v49, %v1602_v43  ;;  %1342 = vpow2.f32 %v1105_v47  ;;  %v1665_v53 = vpop.f32.mrf.mxu0 }
 0x147   :  { %v1331_v54 = vpop.eup %1330  ;;  %v520_v56 = vadd.f32 1.0, %v1329_v51  ;;  %v1106_v57 = vmul.f32 -1.442695, %v1665_v53 }
 0x148   :  { %v612_v59 = vmul.f32 %v1331_v54, %v1604_v45  ;;  %1212 = vmatprep.mubr.f32.mxu1 %v643_v52  ;;  %v1669_v40 = vpop.f32.mrf.mxu0 }
 0x149   :  { %1344 = vrcp.f32 %v520_v56 }
 0x14a   :  { %v1333_v60 = vpop.eup %1332  ;;  %v644_v61 = vmul.f32 %v612_v59, %v1607_v48  ;;  %1346 = vpow2.f32 %v1106_v57  ;;  %v1674_v43 = vpop.f32.mrf.mxu0 }
 0x14b   :  { %v1335_v1 = vpop.eup %1334  ;;  %v613_v2 = vmul.f32 %v1333_v60, %v1609_v50  ;;  %v1107_v5 = vmul.f32 -1.442695, %v1674_v43  ;;  %v1681_v48 = vpop.f32.mrf.mxu1  ;;  %v1115_v60 = vmul.f32 -1.442695, %v1621_v4 }
 0x14c   :  { %v521_v6 = vadd.f32 1.0, %v1335_v1  ;;  %1213 = vmatmul.mubr.f32.gmra.mxu1 %v644_v61  ;;  %v1678_v45 = vpop.f32.mrf.mxu0 }
 0x14d   :  { %v645_v7 = vmul.f32 %v613_v2, %v1612_v55  ;;  %1348 = vpow2.f32 %v1107_v5  ;;  %v1690_v18 = vpop.f32.mrf.mxu1  ;;  %v1116_v2 = vmul.f32 -1.442695, %v1638_v21 }
 0x14e   :  { %v1337_v8 = vpop.eup %1336  ;;  %1350 = vrcp.f32 %v521_v6  ;;  %v1683_v10 = vpop.f32.mrf.mxu0 }
 0x14f   :  { %v1339_v11 = vpop.eup %1338  ;;  %v614_v14 = vmul.f32 %v1337_v8, %v1614_v58  ;;  %v1108_v50 = vmul.f32 -1.442695, %v1683_v10  ;;  %1215 = vmatprep.mubr.f32.mxu1 %v645_v7  ;;  %v1699_v28 = vpop.f32.mrf.mxu1 }
 0x150   :  { %v522_v15 = vadd.f32 1.0, %v1339_v11  ;;  %v1687_v0 = vpop.f32.mrf.mxu0 }
 0x151   :  { %v646_v16 = vmul.f32 %v614_v14, %v1617_v63  ;;  %1352 = vpow2.f32 %v1108_v50  ;;  %v1708_v44 = vpop.f32.mrf.mxu1  ;;  %v1117_v14 = vmul.f32 -1.442695, %v1654_v33 }
 0x152   :  { %v1341_v55 = vpop.eup %1340  ;;  %1354 = vrcp.f32 %v522_v15  ;;  %v1692_v19 = vpop.f32.mrf.mxu0 }
 0x153   :  { %v1343_v22 = vpop.eup %1342  ;;  %v615_v23 = vmul.f32 %v1341_v55, %v1619_v3  ;;  %v1109_v58 = vmul.f32 -1.442695, %v1692_v19  ;;  %1216 = vmatmul.mubr.f32.gmra.mxu1 %v646_v16  ;;  %v1717_v56 = vpop.f32.mrf.mxu1  ;;  %v1118_v16 = vmul.f32 -1.442695, %v1672_v62 }
 0x154   :  { %v523_v24 = vadd.f32 1.0, %v1343_v22  ;;  %v1696_v25 = vpop.f32.mrf.mxu0 }
 0x155   :  { %v647_v27 = vmul.f32 %v615_v23, %v1624_v9  ;;  %1356 = vpow2.f32 %v1109_v58  ;;  %v1728_v7 = vpop.f32.mrf.mxu1 }
 0x156   :  { %v1345_v63 = vpop.eup %1344  ;;  %1358 = vrcp.f32 %v523_v24  ;;  %v1701_v32 = vpop.f32.mrf.mxu0 }
 0x157   :  { %v1347_v34 = vpop.eup %1346  ;;  %v616_v36 = vmul.f32 %v1345_v63, %v1627_v12  ;;  %v1110_v3 = vmul.f32 -1.442695, %v1701_v32  ;;  %1218 = vmatprep.mubr.f32.mxu1 %v647_v27  ;;  %v1739_v23 = vpop.f32.mrf.mxu1  ;;  %v1119_v27 = vmul.f32 -1.442695, %v1690_v18 }
 0x158   :  { %v524_v37 = vadd.f32 1.0, %v1347_v34  ;;  %v1705_v30 = vpop.f32.mrf.mxu0 }
 0x159   :  { %v648_v41 = vmul.f32 %v616_v36, %v1633_v17  ;;  %1360 = vpow2.f32 %v1110_v3  ;;  %v1120_v36 = vmul.f32 -1.442695, %v1708_v44 }
 0x15a   :  { %v1349_v9 = vpop.eup %1348  ;;  %1362 = vrcp.f32 %v524_v37  ;;  %v1710_v46 = vpop.f32.mrf.mxu0 }
 0x15b   :  { %v1351_v47 = vpop.eup %1350  ;;  %v525_v49 = vadd.f32 1.0, %v1349_v9  ;;  %v1111_v51 = vmul.f32 -1.442695, %v1710_v46  ;;  %1219 = vmatmul.mubr.f32.gmra.mxu1 %v648_v41  ;;  %v1748_v37 = vpop.f32.mrf.mxu1 }
 0x15c   :  { %v617_v12 = vmul.f32 %v1351_v47, %v1636_v20  ;;  %v1714_v52 = vpop.f32.mrf.mxu0  ;;  %v1121_v47 = vmul.f32 -1.442695, %v1728_v7 }
 0x15d   :  { %1364 = vrcp.f32 %v525_v49 }
 0x15e   :  { %v1353_v54 = vpop.eup %1352  ;;  %v649_v17 = vmul.f32 %v617_v12, %v1642_v26  ;;  %1366 = vpow2.f32 %v1111_v51  ;;  %v1719_v57 = vpop.f32.mrf.mxu0  ;;  %v1122_v51 = vmul.f32 -1.442695, %v1748_v37 }
 0x15f   :  { %v1355_v59 = vpop.eup %1354  ;;  %v526_v61 = vadd.f32 1.0, %v1353_v54  ;;  %v1112_v1 = vmul.f32 -1.442695, %v1719_v57 }
 0x160   :  { %v618_v20 = vmul.f32 %v1355_v59, %v1645_v29  ;;  %1221 = vmatprep.mubr.f32.mxu1 %v649_v17  ;;  %v1725_v5 = vpop.f32.mrf.mxu0 }
 0x161   :  { %1368 = vrcp.f32 %v526_v61 }
 0x162   :  { %v1357_v26 = vpop.eup %1356  ;;  %v650_v6 = vmul.f32 %v618_v20, %v1651_v39  ;;  %1370 = vpow2.f32 %v1112_v1  ;;  %v1730_v8 = vpop.f32.mrf.mxu0 }
 0x163   :  { %v1359_v11 = vpop.eup %1358  ;;  %1372 = vpow2.f32 %v1115_v60  ;;  %v527_v50 = vadd.f32 1.0, %v1357_v26  ;;  %v1113_v15 = vmul.f32 -1.442695, %v1730_v8 }
 0x164   :  { %1374 = vpow2.f32 %v1116_v2  ;;  %v619_v29 = vmul.f32 %v1359_v11, %v1656_v42  ;;  %1222 = vmatmul.mubr.f32.gmra.mxu1 %v650_v6  ;;  %v1736_v55 = vpop.f32.mrf.mxu0 }
 0x165   :  { %1376 = vrcp.f32 %v527_v50 }
 0x166   :  { %v1361_v39 = vpop.eup %1360  ;;  %v651_v22 = vmul.f32 %v619_v29, %v1660_v35  ;;  %1378 = vpow2.f32 %v1113_v15  ;;  %v1741_v58 = vpop.f32.mrf.mxu0 }
 0x167   :  { %v1363_v24 = vpop.eup %1362  ;;  %1380 = vpow2.f32 %v1117_v14  ;;  %v528_v63 = vadd.f32 1.0, %v1361_v39  ;;  %v1114_v42 = vmul.f32 -1.442695, %v1741_v58 }
 0x168   :  { %1382 = vpow2.f32 %v1118_v16  ;;  %v620_v34 = vmul.f32 %v1363_v24, %v1665_v53  ;;  %1224 = vmatprep.mubr.f32.mxu1 %v651_v22 }
 0x169   :  { %1384 = vrcp.f32 %v528_v63 }
 0x16a   :  { %v1365_v35 = vpop.eup %1364  ;;  %v652_v3 = vmul.f32 %v620_v34, %v1669_v40  ;;  %1386 = vpow2.f32 %v1114_v42 }
 0x16b   :  { %v1367_v41 = vpop.eup %1366  ;;  %1388 = vpow2.f32 %v1119_v27  ;;  %v621_v9 = vmul.f32 %v1365_v35, %v1674_v43 }
 0x16c   :  { %v529_v49 = vadd.f32 1.0, %v1367_v41  ;;  %1225 = vmatmul.mubr.f32.gmra.mxu1 %v652_v3  ;;  %1390 = vpow2.f32 %v1120_v36 }
 0x16d   :  { %v653_v53 = vmul.f32 %v621_v9, %v1678_v45 }
 0x16e   :  { %v1369_v12 = vpop.eup %1368  ;;  %1392 = vrcp.f32 %v529_v49 }
 0x16f   :  { %v1371_v54 = vpop.eup %1370  ;;  %v622_v40 = vmul.f32 %v1369_v12, %v1683_v10  ;;  %1394 = vpow2.f32 %v1121_v47  ;;  %1227 = vmatprep.mubr.f32.mxu1 %v653_v53 }
 0x170   :  { %v1373_v17 = vpop.eup %1372  ;;  %v530_v59 = vadd.f32 1.0, %v1371_v54  ;;  %1396 = vpow2.f32 %v1122_v51  ;;  %v362_v54 = vpop.f32.mrf.mxu0 }
 0x171   :  { %v1375_v60 = vpop.eup %1374  ;;  %v654_v43 = vmul.f32 %v622_v40, %v1687_v0  ;;  %v533_v45 = vadd.f32 1.0, %v1373_v17 }
 0x172   :  { %v1377_v61 = vpop.eup %1376  ;;  %1398 = vrcp.f32 %v530_v59  ;;  %v534_v11 = vadd.f32 1.0, %v1375_v60 }
 0x173   :  { %v1379_v1 = vpop.eup %1378  ;;  %v623_v2 = vmul.f32 %v1377_v61, %v1692_v19  ;;  %1228 = vmatmul.mubr.f32.gmra.mxu1 %v654_v43 }
 0x174   :  { %v1381_v20 = vpop.eup %1380  ;;  %v531_v26 = vadd.f32 1.0, %v1379_v1 }
 0x175   :  { %v1383_v6 = vpop.eup %1382  ;;  %v655_v10 = vmul.f32 %v623_v2, %v1696_v25  ;;  %v535_v15 = vadd.f32 1.0, %v1381_v20 }
 0x176   :  { %v1385_v14 = vpop.eup %1384  ;;  %1400 = vrcp.f32 %v531_v26  ;;  %v536_v22 = vadd.f32 1.0, %v1383_v6 }
 0x177   :  { %v1387_v50 = vpop.eup %1386  ;;  %1402 = vrcp.f32 %v533_v45  ;;  %v624_v0 = vmul.f32 %v1385_v14, %v1701_v32  ;;  %1230 = vmatprep.mubr.f32.mxu1 %v655_v10 }
 0x178   :  { %v1389_v29 = vpop.eup %1388  ;;  %v532_v16 = vadd.f32 1.0, %v1387_v50  ;;  %1404 = vrcp.f32 %v534_v11 }
 0x179   :  { %v656_v19 = vmul.f32 %v624_v0, %v1705_v30  ;;  %v1391_v39 = vpop.eup %1390  ;;  %v537_v27 = vadd.f32 1.0, %v1389_v29 }
 0x17a   :  { %1406 = vrcp.f32 %v532_v16  ;;  %v538_v34 = vadd.f32 1.0, %v1391_v39 }
 0x17b   :  { %v1393_v24 = vpop.eup %1392  ;;  %1408 = vrcp.f32 %v535_v15  ;;  %1231 = vmatmul.mubr.f32.gmra.mxu1 %v656_v19 }
 0x17c   :  { %v1395_v25 = vpop.eup %1394  ;;  %v625_v63 = vmul.f32 %v1393_v24, %v1710_v46  ;;  %1410 = vrcp.f32 %v536_v22 }
 0x17d   :  { %v1397_v42 = vpop.eup %1396  ;;  %1412 = vrcp.f32 %v537_v27  ;;  %v539_v35 = vadd.f32 1.0, %v1395_v25 }
 0x17e   :  { %v657_v32 = vmul.f32 %v625_v63, %v1714_v52  ;;  %1414 = vrcp.f32 %v538_v34  ;;  %v540_v3 = vadd.f32 1.0, %v1397_v42 }
 0x17f   :  { %v1399_v36 = vpop.eup %1398  ;;  %1416 = vrcp.f32 %v539_v35 }
 0x180   :  { %v626_v30 = vmul.f32 %v1399_v36, %v1719_v57  ;;  %1233 = vmatprep.mubr.f32.mxu1 %v657_v32  ;;  %1418 = vrcp.f32 %v540_v3 }
 0x182   :  { %v658_v41 = vmul.f32 %v626_v30, %v1725_v5 }
 0x183   :  { %v1401_v9 = vpop.eup %1400 }
 0x184   :  { %v1403_v47 = vpop.eup %1402  ;;  %v627_v46 = vmul.f32 %v1401_v9, %v1730_v8  ;;  %1234 = vmatmul.mubr.f32.gmra.mxu1 %v658_v41 }
 0x185   :  { %v1405_v49 = vpop.eup %1404  ;;  %v629_v51 = vmul.f32 %v1403_v47, %v1621_v4 }
 0x186   :  { %v659_v52 = vmul.f32 %v627_v46, %v1736_v55  ;;  %v630_v5 = vmul.f32 %v1405_v49, %v1638_v21 }
 0x187   :  { %v1407_v53 = vpop.eup %1406  ;;  %v661_v59 = vmul.f32 %v629_v51, %v1629_v13 }
 0x188   :  { %v1409_v12 = vpop.eup %1408  ;;  %v628_v57 = vmul.f32 %v1407_v53, %v1741_v58  ;;  %1236 = vmatprep.mubr.f32.mxu1 %v659_v52  ;;  %v662_v55 = vmul.f32 %v630_v5, %v1647_v31 }
 0x189   :  { %v1411_v17 = vpop.eup %1410  ;;  %v631_v8 = vmul.f32 %v1409_v12, %v1654_v33 }
 0x18a   :  { %v660_v40 = vmul.f32 %v628_v57, %v362_v54  ;;  %v1413_v60 = vpop.eup %1412  ;;  %v632_v4 = vmul.f32 %v1411_v17, %v1672_v62 }
 0x18b   :  { %v1415_v43 = vpop.eup %1414  ;;  %v663_v58 = vmul.f32 %v631_v8, %v1663_v38  ;;  %v633_v61 = vmul.f32 %v1413_v60, %v1690_v18  ;;  %v410_v18 = vpop.f32.mrf.mxu1 }
 0x18c   :  { %1237 = vmatmul.mubr.f32.gmra.mxu1 %v660_v40  ;;  %v1417_v1 = vpop.eup %1416  ;;  %v664_v21 = vmul.f32 %v632_v4, %v1681_v48  ;;  %v634_v13 = vmul.f32 %v1415_v43, %v1708_v44 }
 0x18d   :  { %1239 = vmatprep.mubr.f32.mxu1 %v661_v59  ;;  %v1419_v33 = vpop.eup %1418  ;;  %v665_v45 = vmul.f32 %v633_v61, %v1699_v28  ;;  %v635_v2 = vmul.f32 %v1417_v1, %v1728_v7 }
 0x18e   :  { %v666_v31 = vmul.f32 %v634_v13, %v1717_v56  ;;  %v636_v38 = vmul.f32 %v1419_v33, %v1748_v37 }
 0x18f   :  { %v667_v62 = vmul.f32 %v635_v2, %v1739_v23 }
 0x190   :  { %1240 = vmatmul.mubr.f32.gmra.mxu1 %v662_v55  ;;  %v668_v20 = vmul.f32 %v636_v38, %v410_v18 }
 0x191   :  { %1242 = vmatprep.mubr.f32.mxu1 %v663_v58 }
 0x194   :  { %1243 = vmatmul.mubr.f32.gmra.mxu1 %v664_v21 }
 0x195   :  { %1245 = vmatprep.mubr.f32.mxu1 %v665_v45 }
 0x198   :  { %1246 = vmatmul.mubr.f32.gmra.mxu1 %v666_v31 }
 0x199   :  { %1248 = vmatprep.mubr.f32.mxu1 %v667_v62 }
 0x19c   :  { %1249 = vmatmul.mubr.f32.gmra.mxu1 %v668_v20 }
 0x1f3   :  { %v1205_v48 = vpop.f32.mrf.mxu1 }
 0x1f4   :  { %1042 = vst [vmem:[#allocation9 + $0x8] sm:$0xff] %v1205_v48 }
 0x1f5   :  { %v783_v44 = vpop.f32.mrf.mxu1 }
 0x1f6   :  { %1041 = vst [vmem:[#allocation9] sm:$0xff] %v783_v44 }
 0x1fb   :  { %v1208_v28 = vpop.f32.mrf.mxu1 }
 0x1fc   :  { %1044 = vst [vmem:[#allocation9 + $0x18] sm:$0xff] %v1208_v28 }
 0x1fd   :  { %v793_v7 = vpop.f32.mrf.mxu1 }
 0x1fe   :  { %1043 = vst [vmem:[#allocation9 + $0x10] sm:$0xff] %v793_v7 }
 0x204   :  { %v1211_v26 = vpop.f32.mrf.mxu1 }
 0x205   :  { %1046 = vst [vmem:[#allocation9 + $0x28] sm:$0xff] %v1211_v26 }
 0x206   :  { %v803_v56 = vpop.f32.mrf.mxu1 }
 0x207   :  { %1045 = vst [vmem:[#allocation9 + $0x20] sm:$0xff] %v803_v56 }
 0x20c   :  { %v1214_v37 = vpop.f32.mrf.mxu1 }
 0x20d   :  { %1048 = vst [vmem:[#allocation9 + $0x38] sm:$0xff] %v1214_v37 }
 0x20e   :  { %v813_v23 = vpop.f32.mrf.mxu1 }
 0x20f   :  { %1047 = vst [vmem:[#allocation9 + $0x30] sm:$0xff] %v813_v23 }
 0x213   :  { %v1217_v6 = vpop.f32.mrf.mxu1 }
 0x214   :  { %1050 = vst [vmem:[#allocation9 + $0x48] sm:$0xff] %v1217_v6 }
 0x215   :  { %v823_v11 = vpop.f32.mrf.mxu1 }
 0x216   :  { %1049 = vst [vmem:[#allocation9 + $0x40] sm:$0xff] %v823_v11 }
 0x21b   :  { %v1220_v10 = vpop.f32.mrf.mxu1 }
 0x21c   :  { %1052 = vst [vmem:[#allocation9 + $0x58] sm:$0xff] %v1220_v10 }
 0x21d   :  { %v833_v14 = vpop.f32.mrf.mxu1 }
 0x21e   :  { %1051 = vst [vmem:[#allocation9 + $0x50] sm:$0xff] %v833_v14 }
 0x224   :  { %v1223_v50 = vpop.f32.mrf.mxu1 }
 0x225   :  { %1054 = vst [vmem:[#allocation9 + $0x68] sm:$0xff] %v1223_v50 }
 0x226   :  { %v843_v15 = vpop.f32.mrf.mxu1 }
 0x227   :  { %1053 = vst [vmem:[#allocation9 + $0x60] sm:$0xff] %v843_v15 }
 0x22c   :  { %v1226_v0 = vpop.f32.mrf.mxu1 }
 0x22d   :  { %1056 = vst [vmem:[#allocation9 + $0x78] sm:$0xff] %v1226_v0 }
 0x22e   :  { %v853_v29 = vpop.f32.mrf.mxu1 }
 0x22f   :  { %1055 = vst [vmem:[#allocation9 + $0x70] sm:$0xff] %v853_v29 }
 0x233   :  { %v1229_v16 = vpop.f32.mrf.mxu1 }
 0x234   :  { %1058 = vst [vmem:[#allocation9 + $0x88] sm:$0xff] %v1229_v16 }
 0x235   :  { %v863_v19 = vpop.f32.mrf.mxu1 }
 0x236   :  { %1057 = vst [vmem:[#allocation9 + $0x80] sm:$0xff] %v863_v19 }
 0x23b   :  { %v1232_v39 = vpop.f32.mrf.mxu1 }
 0x23c   :  { %1060 = vst [vmem:[#allocation9 + $0x98] sm:$0xff] %v1232_v39 }
 0x23d   :  { %v873_v22 = vpop.f32.mrf.mxu1 }
 0x23e   :  { %1059 = vst [vmem:[#allocation9 + $0x90] sm:$0xff] %v873_v22 }
 0x244   :  { %v1235_v24 = vpop.f32.mrf.mxu1 }
 0x245   :  { %1062 = vst [vmem:[#allocation9 + $0xa8] sm:$0xff] %v1235_v24 }
 0x246   :  { %v883_v27 = vpop.f32.mrf.mxu1 }
 0x247   :  { %1061 = vst [vmem:[#allocation9 + $0xa0] sm:$0xff] %v883_v27 }
 0x24c   :  { %v1238_v25 = vpop.f32.mrf.mxu1 }
 0x24d   :  { %1064 = vst [vmem:[#allocation9 + $0xb8] sm:$0xff] %v1238_v25 }
 0x24e   :  { %v893_v63 = vpop.f32.mrf.mxu1 }
 0x24f   :  { %1063 = vst [vmem:[#allocation9 + $0xb0] sm:$0xff] %v893_v63 }
 0x250   :  { %v1241_v42 = vpop.f32.mrf.mxu1 }
 0x251   :  { %1066 = vst [vmem:[#allocation9 + $0xc8] sm:$0xff] %v1241_v42 }
 0x252   :  { %v903_v34 = vpop.f32.mrf.mxu1 }
 0x253   :  { %1065 = vst [vmem:[#allocation9 + $0xc0] sm:$0xff] %v903_v34 }
 0x254   :  { %v1244_v32 = vpop.f32.mrf.mxu1 }
 0x255   :  { %1068 = vst [vmem:[#allocation9 + $0xd8] sm:$0xff] %v1244_v32 }
 0x256   :  { %v913_v36 = vpop.f32.mrf.mxu1 }
 0x257   :  { %1067 = vst [vmem:[#allocation9 + $0xd0] sm:$0xff] %v913_v36 }
 0x258   :  { %v1247_v35 = vpop.f32.mrf.mxu1 }
 0x259   :  { %1070 = vst [vmem:[#allocation9 + $0xe8] sm:$0xff] %v1247_v35 }
 0x25a   :  { %v923_v30 = vpop.f32.mrf.mxu1 }
 0x25b   :  { %1069 = vst [vmem:[#allocation9 + $0xe0] sm:$0xff] %v923_v30 }
 0x25c   :  { %v1250_v3 = vpop.f32.mrf.mxu1 }
 0x25d   :  { %1072 = vst [vmem:[#allocation9 + $0xf8] sm:$0xff] %v1250_v3 }
 0x25e   :  { %v933_v41 = vpop.f32.mrf.mxu1 }
 0x25f   :  { %1071 = vst [vmem:[#allocation9 + $0xf0] sm:$0xff] %v933_v41 }
 0x260   :  { %1491 = shalt.err (!%p1488_p5)
}
 0x261   :  { %1084 = dma.vmem_to_hbm [thread:$0]  %s1079_s2, 4096, %s1791_s3, [#allocation5], %s1510_s22, %s1510_s22, %s1511_s23  }
 0x262   :  { %1504 = dma.done.wait [#allocation5], 4096  }
 0x263   :  { %1505 = vsyncadd [#allocation5], 4294963200 }
 0x264   :  { %1088 = vsyncpa [#allocation4], 1 }
 0x265   :  { %1089 = vsyncpa [#allocation7], 1 }
 0x266   :  { %1090 = vsyncpa [#allocation5], 1 }

</bundles_post_ra>
